<compile_context>
chip_gen: v7x
topology: tpu7x:2x2x1
jax: 0.10.0
libtpu: 0.0.40
codegen_flags: <defaults>
</compile_context>

<pallas_src>
import functools

import jax
import jax.numpy as jnp
from jax.experimental import pallas as pl
from jax.experimental.pallas import tpu as pltpu


def attention_kernel(hid_ref, enc_ref, whT_ref, weT_ref, b_ref, v_ref, out_ref,
                     *, elementwise_bf16: bool):
    # Per-grid-step block (TB batch rows at once):
    #   hid_ref: (TB, H)         enc_ref: (TB, T, H)
    #   whT_ref: (H, H) = W_h^T  weT_ref: (H, H) = W_e^T  (pre-transposed in wrapper)
    #   b_ref:   (1, H)          v_ref:   (1, H)
    #   out_ref: (TB, T)
    tb, t, h = enc_ref.shape

    # hidden projection: (TB, H) @ (H, H) -- weights already transposed, no XLU .T here
    hproj = jnp.dot(hid_ref[...], whT_ref[...],
                    preferred_element_type=jnp.float32)                        # (TB, H)

    # encoder projection: flatten (TB, T, H) -> (TB*T, H): one big MXU matmul per step.
    # (T is kept a multiple of 8 so this flatten is layout-free.)
    enc_flat = enc_ref[...].reshape(tb * t, h)
    eproj = jnp.dot(enc_flat, weT_ref[...],
                    preferred_element_type=jnp.float32)                        # (TB*T, H)

    # energy = tanh(W_h h + W_e e_t + b)                                       -> (TB, T, H)
    pre = (eproj.reshape(tb, t, h)
           + hproj.reshape(tb, 1, h)
           + b_ref[...].astype(jnp.float32).reshape(1, 1, h))

    if elementwise_bf16:
        # bf16 tanh + mul (EUP/VPU take bf16 on v6e/v7x); reduction back in f32.
        energy = jnp.tanh(pre.astype(jnp.bfloat16))
        prod = energy * v_ref[...].astype(jnp.bfloat16).reshape(1, 1, h)
        scores = jnp.sum(prod.astype(jnp.float32), axis=-1)                    # (TB, T)
    else:
        energy = jnp.tanh(pre)
        scores = jnp.sum(energy * v_ref[...].astype(jnp.float32).reshape(1, 1, h),
                         axis=-1)                                              # (TB, T)

    # row-wise numerically-stable softmax over T (exact divide: denom is only (TB,1))
    m = jnp.max(scores, axis=-1, keepdims=True)
    e = jnp.exp(scores - m)
    denom = jnp.sum(e, axis=-1, keepdims=True)
    out_ref[...] = (e / denom).astype(out_ref.dtype)


def _round_up(x, m):
    return ((x + m - 1) // m) * m


def _physical_vmem_bytes():
    try:
        return int(pltpu.get_tpu_info().vmem_capacity_bytes)
    except Exception:
        # Conservative fallback = v7x per-TensorCore VMEM (smallest of v5e/v6e/v7x).
        return 64 * 1024 * 1024


def _device_supports_bf16_elementwise():
    try:
        kind = jax.devices()[0].device_kind.lower()
    except Exception:
        return False
    # v5e and older have no bf16 VPU/EUP; v6e / v7x do.
    return not any(g in kind for g in ("v2", "v3", "v4", "v5"))


def attention_pallas(hidden, encoder_outputs, attn_weight, attn_bias, v,
                     *, stream_bf16=None, elementwise_bf16=None, batch_tile=None):
    """hidden: (B,H), encoder_outputs: (B,T,H), attn_weight: (H,2H), attn_bias: (H,),
       v: (H,)  ->  (B, T) softmax attention weights (float32).

    stream_bf16:
        None  -> stream encoder_outputs/W_e in bf16 only if encoder_outputs is already
                 bf16 (otherwise the wrapper-side cast would cost an extra HBM pass;
                 push that cast upstream into the producer instead).
        True  -> force bf16 streaming (inputs degraded to bf16; MXU accumulates f32).
    elementwise_bf16:
        None  -> bf16 tanh/v-mul when streaming bf16 AND the chip has a bf16 VPU/EUP.
    """
    B, H = hidden.shape
    Be, T, He = encoder_outputs.shape
    assert Be == B and He == H

    hidden = hidden.astype(jnp.float32)

    if stream_bf16 is None:
        stream_bf16 = encoder_outputs.dtype == jnp.bfloat16
    if stream_bf16:
        encoder_outputs = encoder_outputs.astype(jnp.bfloat16)
    else:
        encoder_outputs = encoder_outputs.astype(jnp.float32)

    if elementwise_bf16 is None:
        elementwise_bf16 = bool(stream_bf16) and _device_supports_bf16_elementwise()

    # Split Linear(2H -> H) weight: first H input features act on `hidden`
    # (torch.cat((h, encoder_outputs), 2) order), last H on encoder_outputs.
    # Pre-transpose once in the wrapper so the kernel never transposes.
    w_hT = attn_weight[:, :H].T.astype(jnp.float32)                 # (H, H)
    w_eT = attn_weight[:, H:].T.astype(encoder_outputs.dtype)       # (H, H), follows enc dtype
    bias2d = attn_bias.reshape(1, H).astype(jnp.float32)
    v2d = v.reshape(1, H).astype(jnp.float32)

    # ---- VMEM model & batch-tile sizing -------------------------------------------------
    phys_vmem = _physical_vmem_bytes()
    vmem_limit = int(min((phys_vmem * 3) // 4, 96 * 1024 * 1024))

    enc_item = jnp.dtype(encoder_outputs.dtype).itemsize
    # Per batch-row bytes at one grid step:
    #   2x double-buffered enc tile + ~8 B/elem of f32 eproj/energy temps
    #   + double-buffered hidden & out tiles.
    per_row = T * H * (2 * enc_item + 8) + 2 * 4 * (T + H)
    # Fixed (grid-invariant, single-buffered): W_h^T + W_e^T + bias + v.
    fixed = 2 * H * H * 4 + 2 * H * 4
    budget = max(per_row, int(0.75 * (vmem_limit - fixed)))

    if batch_tile is None:
        TB = min(B, max(1, budget // per_row))
        if B >= 16:
            # Keep at least 2 grid steps so both v7x TensorCores get work over the
            # "parallel" batch axis (near-free extra step on single-TC chips).
            TB = min(TB, _round_up(-(-B // 2), 8))
        if TB < B:
            TB = max(8, (TB // 8) * 8)   # sublane-aligned batch tile when tiling
            TB = min(TB, B)
    else:
        TB = int(batch_tile)
    G = pl.cdiv(B, TB)
    # NOTE: no jnp.pad -- a ragged last batch tile is handled by Pallas OOB masking;
    # each output row depends only on its own input row, so padded rows are dropped.

    kernel = functools.partial(attention_kernel, elementwise_bf16=bool(elementwise_bf16))

    def _build(single_buffer_invariants):
        inv_kw = ({"pipeline_mode": pl.Buffered(1)} if single_buffer_invariants else {})
        grid_spec = pltpu.PrefetchScalarGridSpec(
            num_scalar_prefetch=0,
            grid=(G,),
            in_specs=[
                pl.BlockSpec((TB, H), lambda g: (g, 0)),                 # hidden
                pl.BlockSpec((TB, T, H), lambda g: (g, 0, 0)),           # encoder_outputs
                pl.BlockSpec((H, H), lambda g: (0, 0), **inv_kw),        # W_h^T (invariant)
                pl.BlockSpec((H, H), lambda g: (0, 0), **inv_kw),        # W_e^T (invariant)
                pl.BlockSpec((1, H), lambda g: (0, 0), **inv_kw),        # bias  (invariant)
                pl.BlockSpec((1, H), lambda g: (0, 0), **inv_kw),        # v     (invariant)
            ],
            out_specs=pl.BlockSpec((TB, T), lambda g: (g, 0)),
        )
        return pl.pallas_call(
            kernel,
            out_shape=jax.ShapeDtypeStruct((B, T), jnp.float32),
            grid_spec=grid_spec,
            compiler_params=pltpu.CompilerParams(
                dimension_semantics=("parallel",),
                vmem_limit_bytes=vmem_limit,
            ),
        )

    try:
        return _build(True)(hidden, encoder_outputs, w_hT, w_eT, bias2d, v2d)
    except Exception:
        # Fallback if this Pallas version rejects Buffered(1) on invariant inputs.
        return _build(False)(hidden, encoder_outputs, w_hT, w_eT, bias2d, v2d)


def attention_reference(hidden, encoder_outputs, attn_weight, attn_bias, v):
    """Pure-JAX mirror of the PyTorch forward, for verification."""
    B, T, H = encoder_outputs.shape
    h_rep = jnp.broadcast_to(hidden[:, None, :], (B, T, H))
    cat = jnp.concatenate([h_rep, encoder_outputs], axis=2)          # (B, T, 2H)
    energy = jnp.tanh(
        jnp.einsum("btk,hk->bth", cat, attn_weight,
                   precision=jax.lax.Precision.HIGHEST) + attn_bias)
    scores = jnp.einsum("h,bth->bt", v, energy,
                        precision=jax.lax.Precision.HIGHEST)         # (B, T)
    return jax.nn.softmax(scores, axis=1)


if __name__ == "__main__":
    # Small shapes consistent with the module: batch=2, seq(T)=8, hidden_dim=32
    B, T, H = 2, 8, 32
    key = jax.random.PRNGKey(0)
    k_hid, k_enc, k_w, k_b, k_v = jax.random.split(key, 5)

    hidden = jax.random.normal(k_hid, (B, H), dtype=jnp.float32)
    encoder_outputs = jax.random.normal(k_enc, (B, T, H), dtype=jnp.float32)

    # Deterministic parameter init (shapes: nn.Linear(2H, H) and nn.Parameter(torch.rand(H)))
    bound = 1.0 / jnp.sqrt(2.0 * H)
    attn_weight = jax.random.uniform(k_w, (H, 2 * H), minval=-bound, maxval=bound,
                                     dtype=jnp.float32)
    attn_bias = jax.random.uniform(k_b, (H,), minval=-bound, maxval=bound,
                                   dtype=jnp.float32)
    v = jax.random.uniform(k_v, (H,), minval=0.0, maxval=1.0, dtype=jnp.float32)

    ref = attention_reference(hidden, encoder_outputs, attn_weight, attn_bias, v)

    # f32 streaming path (exact divide -> tight tolerance)
    out = attention_pallas(hidden, encoder_outputs, attn_weight, attn_bias, v,
                           stream_bf16=False)
    out = jax.block_until_ready(out)
    assert out.shape == (B, T)
    assert jnp.allclose(out, ref, atol=5e-4, rtol=5e-4), "f32 path mismatch vs reference"
    assert jnp.allclose(jnp.sum(out, axis=1), 1.0, atol=1e-5), "softmax rows must sum to 1"

    # bf16-streamed encoder_outputs path (production config when producer emits bf16;
    # inputs degraded to bf16 -> looser tolerance)
    out_bf16 = attention_pallas(hidden, encoder_outputs, attn_weight, attn_bias, v,
                                stream_bf16=True)
    out_bf16 = jax.block_until_ready(out_bf16)
    assert jnp.allclose(out_bf16, ref, atol=2e-2, rtol=2e-2), "bf16 path mismatch vs reference"
    assert jnp.allclose(jnp.sum(out_bf16, axis=1), 1.0, atol=1e-5), "softmax rows must sum to 1"

    print("KERNEL_OK")
</pallas_src>

<mosaic_0001>
module attributes {stable_mosaic.version = 11 : i64} {
  func.func @attention_kernel(%arg0: i32, %arg1: memref<2x32xf32, #tpu.memory_space<vmem>>, %arg2: memref<2x8x32xf32, #tpu.memory_space<vmem>>, %arg3: memref<32x32xf32, #tpu.memory_space<vmem>>, %arg4: memref<32x32xf32, #tpu.memory_space<vmem>>, %arg5: memref<1x32xf32, #tpu.memory_space<vmem>>, %arg6: memref<1x32xf32, #tpu.memory_space<vmem>>, %arg7: memref<2x8xf32, #tpu.memory_space<vmem>>) attributes {dimension_semantics = [#tpu.dimension_semantics<parallel>], iteration_bounds = array<i64: 1>, scalar_prefetch = 0 : i64, scratch_operands = 0 : i64, tpu.core_type = #tpu.core_type<tc>, window_params = [{transform_indices = @transform_0, window_bounds = array<i64: 2, 32>}, {transform_indices = @transform_1, window_bounds = array<i64: 2, 8, 32>}, {pipeline_mode = #tpu.pipeline_mode<synchronous>, transform_indices = @transform_2, window_bounds = array<i64: 32, 32>}, {pipeline_mode = #tpu.pipeline_mode<synchronous>, transform_indices = @transform_3, window_bounds = array<i64: 32, 32>}, {pipeline_mode = #tpu.pipeline_mode<synchronous>, transform_indices = @transform_4, window_bounds = array<i64: 1, 32>}, {pipeline_mode = #tpu.pipeline_mode<synchronous>, transform_indices = @transform_5, window_bounds = array<i64: 1, 32>}, {transform_indices = @transform_6, window_bounds = array<i64: 2, 8>}]} {
    %c0 = arith.constant 0 : index
    %c0_0 = arith.constant 0 : index
    %0 = vector.load %arg1[%c0, %c0_0] : memref<2x32xf32, #tpu.memory_space<vmem>>, vector<2x32xf32>
    %c0_1 = arith.constant 0 : index
    %c0_2 = arith.constant 0 : index
    %1 = vector.load %arg3[%c0_1, %c0_2] : memref<32x32xf32, #tpu.memory_space<vmem>>, vector<32x32xf32>
    %cst = arith.constant dense<0.000000e+00> : vector<2x32xf32>
    %2 = tpu.matmul %0, %1, %cst {dimension_numbers = #tpu.dot_dimension_numbers<[1], [0], [0], [1], [0, 0, 1, 1], [], []>} : vector<2x32xf32>, vector<32x32xf32>, vector<2x32xf32> -> vector<2x32xf32>
    %c0_3 = arith.constant 0 : index
    %c0_4 = arith.constant 0 : index
    %c0_5 = arith.constant 0 : index
    %3 = vector.load %arg2[%c0_3, %c0_4, %c0_5] : memref<2x8x32xf32, #tpu.memory_space<vmem>>, vector<2x8x32xf32>
    %4 = vector.shape_cast %3 : vector<2x8x32xf32> to vector<16x32xf32>
    %c0_6 = arith.constant 0 : index
    %c0_7 = arith.constant 0 : index
    %5 = vector.load %arg4[%c0_6, %c0_7] : memref<32x32xf32, #tpu.memory_space<vmem>>, vector<32x32xf32>
    %cst_8 = arith.constant dense<0.000000e+00> : vector<16x32xf32>
    %6 = tpu.matmul %4, %5, %cst_8 {dimension_numbers = #tpu.dot_dimension_numbers<[1], [0], [0], [1], [0, 0, 1, 1], [], []>} : vector<16x32xf32>, vector<32x32xf32>, vector<16x32xf32> -> vector<16x32xf32>
    %7 = vector.shape_cast %6 : vector<16x32xf32> to vector<2x8x32xf32>
    %8 = vector.shape_cast %2 : vector<2x32xf32> to vector<2x1x32xf32>
    %9 = vector.broadcast %8 : vector<2x1x32xf32> to vector<2x8x32xf32>
    %10 = arith.addf %7, %9 : vector<2x8x32xf32>
    %c0_9 = arith.constant 0 : index
    %c0_10 = arith.constant 0 : index
    %11 = vector.load %arg5[%c0_9, %c0_10] : memref<1x32xf32, #tpu.memory_space<vmem>>, vector<1x32xf32>
    %12 = vector.shape_cast %11 : vector<1x32xf32> to vector<1x1x32xf32>
    %13 = vector.broadcast %12 : vector<1x1x32xf32> to vector<2x8x32xf32>
    %14 = arith.addf %10, %13 : vector<2x8x32xf32>
    %15 = math.tanh %14 : vector<2x8x32xf32>
    %c0_11 = arith.constant 0 : index
    %c0_12 = arith.constant 0 : index
    %16 = vector.load %arg6[%c0_11, %c0_12] : memref<1x32xf32, #tpu.memory_space<vmem>>, vector<1x32xf32>
    %17 = vector.shape_cast %16 : vector<1x32xf32> to vector<1x1x32xf32>
    %18 = vector.broadcast %17 : vector<1x1x32xf32> to vector<2x8x32xf32>
    %19 = arith.mulf %15, %18 : vector<2x8x32xf32>
    %cst_13 = arith.constant dense<0.000000e+00> : vector<2x8xf32>
    %20 = vector.multi_reduction <add>, %19, %cst_13 [2] : vector<2x8x32xf32> to vector<2x8xf32>
    %cst_14 = arith.constant dense<0xFF800000> : vector<2xf32>
    %21 = vector.multi_reduction <maximumf>, %20, %cst_14 [1] : vector<2x8xf32> to vector<2xf32>
    %22 = vector.shape_cast %21 : vector<2xf32> to vector<2x1xf32>
    %23 = vector.broadcast %22 : vector<2x1xf32> to vector<2x8xf32>
    %24 = arith.subf %20, %23 : vector<2x8xf32>
    %25 = math.exp %24 : vector<2x8xf32>
    %cst_15 = arith.constant dense<0.000000e+00> : vector<2xf32>
    %26 = vector.multi_reduction <add>, %25, %cst_15 [1] : vector<2x8xf32> to vector<2xf32>
    %27 = vector.shape_cast %26 : vector<2xf32> to vector<2x1xf32>
    %28 = vector.broadcast %27 : vector<2x1xf32> to vector<2x8xf32>
    %29 = arith.divf %25, %28 : vector<2x8xf32>
    %c0_16 = arith.constant 0 : index
    %c0_17 = arith.constant 0 : index
    %30 = vector.load %arg7[%c0_16, %c0_17] : memref<2x8xf32, #tpu.memory_space<vmem>>, vector<2x8xf32>
    tpu.vector_store %arg7[%c0_16, %c0_17], %29 {strides = array<i32>} : memref<2x8xf32, #tpu.memory_space<vmem>>, vector<2x8xf32>,
    return
  }
  func.func @transform_0(%arg0: i32) -> (i32, i32) {
    %c0_i32 = arith.constant 0 : i32
    %c0_i32_0 = arith.constant 0 : i32
    return %arg0, %c0_i32 : i32, i32
  }
  func.func @transform_1(%arg0: i32) -> (i32, i32, i32) {
    %c0_i32 = arith.constant 0 : i32
    %c0_i32_0 = arith.constant 0 : i32
    %c0_i32_1 = arith.constant 0 : i32
    return %arg0, %c0_i32, %c0_i32_0 : i32, i32, i32
  }
  func.func @transform_2(%arg0: i32) -> (i32, i32) {
    %c0_i32 = arith.constant 0 : i32
    %c0_i32_0 = arith.constant 0 : i32
    %c0_i32_1 = arith.constant 0 : i32
    return %c0_i32, %c0_i32_0 : i32, i32
  }
  func.func @transform_3(%arg0: i32) -> (i32, i32) {
    %c0_i32 = arith.constant 0 : i32
    %c0_i32_0 = arith.constant 0 : i32
    %c0_i32_1 = arith.constant 0 : i32
    return %c0_i32, %c0_i32_0 : i32, i32
  }
  func.func @transform_4(%arg0: i32) -> (i32, i32) {
    %c0_i32 = arith.constant 0 : i32
    %c0_i32_0 = arith.constant 0 : i32
    %c0_i32_1 = arith.constant 0 : i32
    return %c0_i32, %c0_i32_0 : i32, i32
  }
  func.func @transform_5(%arg0: i32) -> (i32, i32) {
    %c0_i32 = arith.constant 0 : i32
    %c0_i32_0 = arith.constant 0 : i32
    %c0_i32_1 = arith.constant 0 : i32
    return %c0_i32, %c0_i32_0 : i32, i32
  }
  func.func @transform_6(%arg0: i32) -> (i32, i32) {
    %c0_i32 = arith.constant 0 : i32
    %c0_i32_0 = arith.constant 0 : i32
    return %arg0, %c0_i32 : i32, i32
  }
}

module attributes {stable_mosaic.version = 11 : i64} {
  func.func @attention_kernel(%arg0: i32, %arg1: memref<2x32xf32, #tpu.memory_space<vmem>>, %arg2: memref<2x8x32xf32, #tpu.memory_space<vmem>>, %arg3: memref<32x32xf32, #tpu.memory_space<vmem>>, %arg4: memref<32x32xf32, #tpu.memory_space<vmem>>, %arg5: memref<1x32xf32, #tpu.memory_space<vmem>>, %arg6: memref<1x32xf32, #tpu.memory_space<vmem>>, %arg7: memref<2x8xf32, #tpu.memory_space<vmem>>) attributes {dimension_semantics = [#tpu.dimension_semantics<parallel>], iteration_bounds = array<i64: 1>, scalar_prefetch = 0 : i64, scratch_operands = 0 : i64, tpu.core_type = #tpu.core_type<tc>, window_params = [{transform_indices = @transform_0, window_bounds = array<i64: 2, 32>}, {transform_indices = @transform_1, window_bounds = array<i64: 2, 8, 32>}, {pipeline_mode = #tpu.pipeline_mode<synchronous>, transform_indices = @transform_2, window_bounds = array<i64: 32, 32>}, {pipeline_mode = #tpu.pipeline_mode<synchronous>, transform_indices = @transform_3, window_bounds = array<i64: 32, 32>}, {pipeline_mode = #tpu.pipeline_mode<synchronous>, transform_indices = @transform_4, window_bounds = array<i64: 1, 32>}, {pipeline_mode = #tpu.pipeline_mode<synchronous>, transform_indices = @transform_5, window_bounds = array<i64: 1, 32>}, {transform_indices = @transform_6, window_bounds = array<i64: 2, 8>}]} {
    %c0 = arith.constant 0 : index
    %c0_0 = arith.constant 0 : index
    %0 = vector.load %arg1[%c0, %c0_0] : memref<2x32xf32, #tpu.memory_space<vmem>>, vector<2x32xf32>
    %c0_1 = arith.constant 0 : index
    %c0_2 = arith.constant 0 : index
    %1 = vector.load %arg3[%c0_1, %c0_2] : memref<32x32xf32, #tpu.memory_space<vmem>>, vector<32x32xf32>
    %cst = arith.constant dense<0.000000e+00> : vector<2x32xf32>
    %2 = tpu.matmul %0, %1, %cst {dimension_numbers = #tpu.dot_dimension_numbers<[1], [0], [0], [1], [0, 0, 1, 1], [], []>} : vector<2x32xf32>, vector<32x32xf32>, vector<2x32xf32> -> vector<2x32xf32>
    %c0_3 = arith.constant 0 : index
    %c0_4 = arith.constant 0 : index
    %c0_5 = arith.constant 0 : index
    %3 = vector.load %arg2[%c0_3, %c0_4, %c0_5] : memref<2x8x32xf32, #tpu.memory_space<vmem>>, vector<2x8x32xf32>
    %4 = vector.shape_cast %3 : vector<2x8x32xf32> to vector<16x32xf32>
    %c0_6 = arith.constant 0 : index
    %c0_7 = arith.constant 0 : index
    %5 = vector.load %arg4[%c0_6, %c0_7] : memref<32x32xf32, #tpu.memory_space<vmem>>, vector<32x32xf32>
    %cst_8 = arith.constant dense<0.000000e+00> : vector<16x32xf32>
    %6 = tpu.matmul %4, %5, %cst_8 {dimension_numbers = #tpu.dot_dimension_numbers<[1], [0], [0], [1], [0, 0, 1, 1], [], []>} : vector<16x32xf32>, vector<32x32xf32>, vector<16x32xf32> -> vector<16x32xf32>
    %7 = vector.shape_cast %6 : vector<16x32xf32> to vector<2x8x32xf32>
    %8 = vector.shape_cast %2 : vector<2x32xf32> to vector<2x1x32xf32>
    %9 = vector.broadcast %8 : vector<2x1x32xf32> to vector<2x8x32xf32>
    %10 = arith.addf %7, %9 : vector<2x8x32xf32>
    %c0_9 = arith.constant 0 : index
    %c0_10 = arith.constant 0 : index
    %11 = vector.load %arg5[%c0_9, %c0_10] : memref<1x32xf32, #tpu.memory_space<vmem>>, vector<1x32xf32>
    %12 = vector.shape_cast %11 : vector<1x32xf32> to vector<1x1x32xf32>
    %13 = vector.broadcast %12 : vector<1x1x32xf32> to vector<2x8x32xf32>
    %14 = arith.addf %10, %13 : vector<2x8x32xf32>
    %15 = math.tanh %14 : vector<2x8x32xf32>
    %c0_11 = arith.constant 0 : index
    %c0_12 = arith.constant 0 : index
    %16 = vector.load %arg6[%c0_11, %c0_12] : memref<1x32xf32, #tpu.memory_space<vmem>>, vector<1x32xf32>
    %17 = vector.shape_cast %16 : vector<1x32xf32> to vector<1x1x32xf32>
    %18 = vector.broadcast %17 : vector<1x1x32xf32> to vector<2x8x32xf32>
    %19 = arith.mulf %15, %18 : vector<2x8x32xf32>
    %cst_13 = arith.constant dense<0.000000e+00> : vector<2x8xf32>
    %20 = vector.multi_reduction <add>, %19, %cst_13 [2] : vector<2x8x32xf32> to vector<2x8xf32>
    %cst_14 = arith.constant dense<0xFF800000> : vector<2xf32>
    %21 = vector.multi_reduction <maximumf>, %20, %cst_14 [1] : vector<2x8xf32> to vector<2xf32>
    %22 = vector.shape_cast %21 : vector<2xf32> to vector<2x1xf32>
    %23 = vector.broadcast %22 : vector<2x1xf32> to vector<2x8xf32>
    %24 = arith.subf %20, %23 : vector<2x8xf32>
    %25 = math.exp %24 : vector<2x8xf32>
    %cst_15 = arith.constant dense<0.000000e+00> : vector<2xf32>
    %26 = vector.multi_reduction <add>, %25, %cst_15 [1] : vector<2x8xf32> to vector<2xf32>
    %27 = vector.shape_cast %26 : vector<2xf32> to vector<2x1xf32>
    %28 = vector.broadcast %27 : vector<2x1xf32> to vector<2x8xf32>
    %29 = arith.divf %25, %28 : vector<2x8xf32>
    %c0_16 = arith.constant 0 : index
    %c0_17 = arith.constant 0 : index
    %30 = vector.load %arg7[%c0_16, %c0_17] : memref<2x8xf32, #tpu.memory_space<vmem>>, vector<2x8xf32>
    tpu.vector_store %arg7[%c0_16, %c0_17], %29 {strides = array<i32>} : memref<2x8xf32, #tpu.memory_space<vmem>>, vector<2x8xf32>,
    return
  }
  func.func @transform_0(%arg0: i32) -> (i32, i32) {
    %c0_i32 = arith.constant 0 : i32
    %c0_i32_0 = arith.constant 0 : i32
    return %arg0, %c0_i32 : i32, i32
  }
  func.func @transform_1(%arg0: i32) -> (i32, i32, i32) {
    %c0_i32 = arith.constant 0 : i32
    %c0_i32_0 = arith.constant 0 : i32
    %c0_i32_1 = arith.constant 0 : i32
    return %arg0, %c0_i32, %c0_i32_0 : i32, i32, i32
  }
  func.func @transform_2(%arg0: i32) -> (i32, i32) {
    %c0_i32 = arith.constant 0 : i32
    %c0_i32_0 = arith.constant 0 : i32
    %c0_i32_1 = arith.constant 0 : i32
    return %c0_i32, %c0_i32_0 : i32, i32
  }
  func.func @transform_3(%arg0: i32) -> (i32, i32) {
    %c0_i32 = arith.constant 0 : i32
    %c0_i32_0 = arith.constant 0 : i32
    %c0_i32_1 = arith.constant 0 : i32
    return %c0_i32, %c0_i32_0 : i32, i32
  }
  func.func @transform_4(%arg0: i32) -> (i32, i32) {
    %c0_i32 = arith.constant 0 : i32
    %c0_i32_0 = arith.constant 0 : i32
    %c0_i32_1 = arith.constant 0 : i32
    return %c0_i32, %c0_i32_0 : i32, i32
  }
  func.func @transform_5(%arg0: i32) -> (i32, i32) {
    %c0_i32 = arith.constant 0 : i32
    %c0_i32_0 = arith.constant 0 : i32
    %c0_i32_1 = arith.constant 0 : i32
    return %c0_i32, %c0_i32_0 : i32, i32
  }
  func.func @transform_6(%arg0: i32) -> (i32, i32) {
    %c0_i32 = arith.constant 0 : i32
    %c0_i32_0 = arith.constant 0 : i32
    return %arg0, %c0_i32 : i32, i32
  }
}

</mosaic_0001>

<bundles_post_ra>
// kernel: tpu_custom_call.1
= control target key start
LH: loop header
LB: loop body
LE: loop exit
PB: predicated region body
PF: predicated region fallthrough
CT: control target
= control target key end

     0   :  { %11 = vsyncpa [#allocation3], 0  ;;  %s747_s0 = inlined_call_operand.hbm [shape: f32[2,32], index: 0, kind: input, shape index: {}]   ;;  %s748_s1 = inlined_call_operand.hbm [shape: f32[2,8,32], index: 1, kind: input, shape index: {}]   ;;  %s749_s2 = inlined_call_operand.hbm [shape: f32[32,32], index: 2, kind: input, shape index: {}]   ;;  %s750_s3 = inlined_call_operand.hbm [shape: f32[32,32], index: 3, kind: input, shape index: {}]   ;;  %s751_s4 = inlined_call_operand.vmem [shape: f32[1,32], index: 4, kind: input, shape index: {}]   ;;  %s752_s5 = inlined_call_operand.vmem [shape: f32[1,32], index: 5, kind: input, shape index: {}]   ;;  %s753_s6 = inlined_call_operand.hbm [shape: f32[2,8], index: 6, kind: output, shape index: {}]  }
   0x1   :  { %12 = vsyncpa [#allocation6], 0 }
   0x2   :  { %13 = vsyncpa [#allocation9], 0 }
   0x3   :  { %14 = vsyncpa [#allocation4], 0  ;;  %s608_s21 = smov [#allocation5]   ;;  %s490_s25 = scalar_lea.hbm %s748_s1, 256 }
   0x4   :  { %s30_s22 = sshll.u32 %s608_s21, 4  ;;  %p491_p0 = scmp.ne.s32.totalorder %s748_s1, %s490_s25  ;;  %s31_s22 = int_to_ptr.vmem [resolvable:$true] %s30_s22 }
   0x5   :  { %p494_p1 = scmp.lt.u32.totalorder %s490_s25, %s748_s1 }
   0x7   :  { %p496_p2 = pnand %p494_p1, %p491_p0 }
   0x9   :  { %499 = shalt.err (!%p496_p2)
}
   0xa   :  { %s500_s30 = scalar_lea.vmem %s31_s22, 256  ;;  %p505_p4 = scmp.lt.s32.totalorder %s31_s22, %s31_s22 }
   0xb   :  { %p501_p3 = scmp.ne.s32.totalorder %s31_s22, %s500_s30  ;;  %p506_p5 = scmp.lt.s32.totalorder %s500_s30, %s500_s30 }
   0xd   :  { %p507_p6 = por %p506_p5, %p505_p4 }
   0xf   :  { %p508_p7 = pnand %p507_p6, %p501_p3 }
  0x11   :  { %511 = shalt.err (!%p508_p7)
}
  0x12   :  { %s609_s7 = smov 128   ;;  %s610_s8 = smov 8  }
  0x13   :  { %36 = dma.hbm_to_vmem [thread:$0]  %s748_s1, 256, %s31_s22, [#allocation6], %s609_s7, %s609_s7, %s610_s8  }
  0x14   :  { %s611_s11 = smov [#allocation2]   ;;  %s612_s13 = smov [#allocation7]  }
  0x15   :  { %s21_s12 = sshll.u32 %s611_s11, 4  ;;  %s42_s14 = sshll.u32 %s612_s13, 4  ;;  %s22_s12 = int_to_ptr.vmem [resolvable:$true] %s21_s12  ;;  %s43_s14 = int_to_ptr.vmem [resolvable:$true] %s42_s14 }
  0x16   :  { %s512_s17 = scalar_lea.hbm %s747_s0, 32 }
  0x17   :  { %p513_p8 = scmp.ne.s32.totalorder %s747_s0, %s512_s17  ;;  %p516_p9 = scmp.lt.u32.totalorder %s512_s17, %s747_s0 }
  0x19   :  { %p518_p10 = pnand %p516_p9, %p513_p8 }
  0x1b   :  { %521 = shalt.err (!%p518_p10)
}
  0x1c   :  { %s522_s1 = scalar_lea.vmem %s22_s12, 32  ;;  %p527_p12 = scmp.lt.s32.totalorder %s22_s12, %s22_s12 }
  0x1d   :  { %p523_p11 = scmp.ne.s32.totalorder %s22_s12, %s522_s1  ;;  %p528_p13 = scmp.lt.s32.totalorder %s522_s1, %s522_s1 }
  0x1f   :  { %p529_p0 = por %p528_p13, %p527_p12 }
  0x21   :  { %p530_p1 = pnand %p529_p0, %p523_p11 }
  0x23   :  { %533 = shalt.err (!%p530_p1)
}
  0x24   :  { %24 = dma.hbm_to_vmem [thread:$0]  %s747_s0, 32, %s22_s12, [#allocation3]  }
  0x25   :  { %s534_s26 = scalar_lea.hbm %s749_s2, 512 }
  0x26   :  { %p535_p2 = scmp.ne.s32.totalorder %s749_s2, %s534_s26  ;;  %p538_p3 = scmp.lt.u32.totalorder %s534_s26, %s749_s2 }
  0x28   :  { %p540_p4 = pnand %p538_p3, %p535_p2 }
  0x2a   :  { %543 = shalt.err (!%p540_p4)
}
  0x2b   :  { %s544_s9 = scalar_lea.vmem %s43_s14, 512  ;;  %p549_p6 = scmp.lt.s32.totalorder %s43_s14, %s43_s14 }
  0x2c   :  { %p545_p5 = scmp.ne.s32.totalorder %s43_s14, %s544_s9  ;;  %p550_p7 = scmp.lt.s32.totalorder %s544_s9, %s544_s9 }
  0x2e   :  { %p551_p8 = por %p550_p7, %p549_p6 }
  0x30   :  { %p552_p9 = pnand %p551_p8, %p545_p5 }
  0x32   :  { %555 = shalt.err (!%p552_p9)
}
  0x33   :  { %48 = dma.hbm_to_vmem [thread:$0]  %s749_s2, 512, %s43_s14, [#allocation6], %s609_s7, %s609_s7, %s610_s8  }
  0x34   :  { %s613_s11 = smov [#allocation8]   ;;  %s556_s16 = scalar_lea.hbm %s750_s3, 512 }
  0x35   :  { %s54_s12 = sshll.u32 %s613_s11, 4  ;;  %p557_p10 = scmp.ne.s32.totalorder %s750_s3, %s556_s16  ;;  %s55_s12 = int_to_ptr.vmem [resolvable:$true] %s54_s12 }
  0x36   :  { %p560_p11 = scmp.lt.u32.totalorder %s556_s16, %s750_s3 }
  0x38   :  { %p562_p12 = pnand %p560_p11, %p557_p10 }
  0x3a   :  { %565 = shalt.err (!%p562_p12)
}
  0x3b   :  { %s566_s21 = scalar_lea.vmem %s55_s12, 512  ;;  %p571_p0 = scmp.lt.s32.totalorder %s55_s12, %s55_s12 }
  0x3c   :  { %p567_p13 = scmp.ne.s32.totalorder %s55_s12, %s566_s21  ;;  %p572_p1 = scmp.lt.s32.totalorder %s566_s21, %s566_s21 }
  0x3e   :  { %p573_p2 = por %p572_p1, %p571_p0 }
  0x40   :  { %p574_p3 = pnand %p573_p2, %p567_p13 }
  0x42   :  { %577 = shalt.err (!%p574_p3)
}
  0x43   :  { %60 = dma.hbm_to_vmem [thread:$0]  %s750_s3, 512, %s55_s12, [#allocation9], %s609_s7, %s609_s7, %s610_s8  }
  0x44   :  { %600 = dma.done.wait [#allocation3], 32  }
  0x45   :  { %601 = vsyncadd [#allocation3], 4294967264 }
  0x46   :  { %602 = dma.done.wait [#allocation6], 768  }
  0x47   :  { %603 = vsyncadd [#allocation6], 4294966528 }
  0x48   :  { %604 = dma.done.wait [#allocation9], 512  }
  0x49   :  { %605 = vsyncadd [#allocation9], 4294966784  ;;  %v614_v0 = vmov 0.0|0.0   ;;  %vm615_vm0 = vmmov 0   ;;  %v616_v1 = vmov 0.0   ;;  %v78_v2 = vld [vmem:[#allocation7] sm:$0xff]  ;;  %v247_v19 = vlaneseq }
  0x4a   :  { %450 = vmatprep.subr.bf16.mxu0 %v614_v0  ;;  %436 = vmatprep.mubr.msk.f32.mxu0 %vm615_vm0, %v616_v1  ;;  %v79_v3 = vld [vmem:[#allocation7 + $0x8] sm:$0xff]  ;;  %v158_v4 = vld [vmem:[#allocation8] sm:$0xff]  ;;  %v80_v7 = vld [vmem:[#allocation7 + $0x10] sm:$0xff]  ;;  %vm82_vm1 = vcmask 261120   ;;  %v617_v17 = vmov 1966171168  }
  0x4b   :  { %v451_v5 = vpack.c.bf16 %v79_v3, %v78_v2  ;;  %v159_v6 = vld [vmem:[#allocation8 + $0x8] sm:$0xff]  ;;  %v81_v8 = vld [vmem:[#allocation7 + $0x18] sm:$0xff]  ;;  %v160_v10 = vld [vmem:[#allocation8 + $0x10] sm:$0xff]  ;;  %v245_v18 = vunpack.c.l.s4 %v617_v17  ;;  %v715_v21 = vshrl.u32 %v247_v19, 7  ;;  %v307_v46 = vand.u32 127, %v247_v19 }
  0x4c   :  { %v456_v9 = vpack.c.bf16 %v159_v6, %v158_v4  ;;  %v161_v11 = vld [vmem:[#allocation8 + $0x18] sm:$0xff]  ;;  %v454_v12 = vpack.c.bf16 %v81_v8, %v80_v7  ;;  %v156_v14 = vld [vmem:[#allocation5] sm:$0xff]  ;;  %v77_v15 = vld [vmem:[#allocation2] sm:$0x3]  ;;  %vm316_vm2 = vcmask 1041409   ;;  %vm319_vm3 = vcmask 58368  }
  0x4d   :  { %452 = vmatpush3.bf16.msra.mxu0 %v451_v5  ;;  %v460_v13 = vpack.c.bf16 %v161_v11, %v160_v10  ;;  %447 = vmatprep.mubr.msk.f32.mxu1 %vm82_vm1, %v156_v14  ;;  %v157_v16 = vld [vmem:[#allocation5 + $0x8] sm:$0xff]  ;;  %v246_v20 = vunpack.c.0.s8 %v245_v18  ;;  %v268_v26 = vsub.s32 0, %v715_v21  ;;  %v415_v33 = vld [vmem:[%s751_s4] ss:$0 sm:$0xff]  ;;  %v310_v48 = vsub.s32 %v307_v46, %v715_v21  ;;  %s619_s4 = smov [#allocation10]  }
  0x4e   :  { %453 = vmatprep.subr.bf16.mxu0 %v614_v0  ;;  %457 = vmatprep.subr.bf16.mxu1 %v456_v9  ;;  %v416_v39 = vld [vmem:[%s752_s5] ss:$0 sm:$0xff]  ;;  %v618_v54 = vmov 0   ;;  %v330_v55 = vsub.s32 1, %v715_v21  ;;  %s401_s5 = sshll.u32 %s619_s4, 4  ;;  %s402_s5 = int_to_ptr.vmem [resolvable:$true] %s401_s5 }
  0x4f   :  { %459 = vmatpush3.bf16.msra.mxu1 %v456_v9  ;;  %v249_v22 = vsub.s32 %v246_v20, %v715_v21  ;;  %477 = vset.pattern.permute.xlu0 %v618_v54  ;;  %s578_s22 = scalar_lea.vmem %s402_s5, 32  ;;  %p583_p5 = scmp.lt.s32.totalorder %s402_s5, %s402_s5 }
  0x50   :  { %461 = vmatprep.subr.bf16.mxu1 %v460_v13  ;;  %476 = vset.pattern.permute.xlu1 %v618_v54  ;;  %p579_p4 = scmp.ne.s32.totalorder %s402_s5, %s578_s22  ;;  %p584_p6 = scmp.lt.s32.totalorder %s578_s22, %s578_s22 }
  0x51   :  { %455 = vmatpush3.bf16.msra.mxu0 %v454_v12 }
  0x52   :  { %p585_p7 = por %p584_p6, %p583_p5 }
  0x53   :  { %463 = vmatpush3.bf16.msra.mxu1 %v460_v13 }
  0x54   :  { %437 = vmatmul.mubr.msk.f32.vlgmr.msra.gmra.mrb[0].mxu0 %vm82_vm1, %v77_v15  ;;  %p586_p8 = pnand %p585_p7, %p579_p4 }
  0x56   :  { %448 = vmatmul.mubr.msk.f32.vlgmr.msra.gmra.mrb[0].mxu1 %vm82_vm1, %v157_v16 }
 0x127   :  { %v152_v23 = vpop.f32.mrb[0].mxu0 }
 0x128   :  { %v250_v24 = vrot.slane %v152_v23, %v249_v22  ;;  %v438_v25 = vpop.f32.mrb[1].mxu0 }
 0x129   :  { %v449_v27 = vpop.f32.mrb[0].mxu1 }
 0x12a   :  { %v251_v28 = vcombine.high %v250_v24, %v250_v24  ;;  %v258_v29 = vrot.slane %v250_v24, %v249_v22  ;;  %v234_v30 = vpop.f32.mrb[1].mxu1 }
 0x12c   :  { %v265_v31 = vrot.slane %v251_v28, %v249_v22  ;;  %v269_v32 = vrot.slane %v258_v29, %v268_v26 }
 0x12e   :  { %v273_v34 = vrot.slane %v265_v31, %v268_v26  ;;  %v276_v35 = vadd.f32 %v269_v32, %v234_v30 }
 0x130   :  { %v277_v36 = vadd.f32 %v449_v27, %v273_v34  ;;  %v285_v37 = vadd.f32 %v415_v33, %v276_v35 }
 0x132   :  { %v286_v38 = vadd.f32 %v415_v33, %v277_v36  ;;  %478 = vtanh.f32 %v285_v37 }
 0x134   :  { %480 = vtanh.f32 %v286_v38 }
 0x13c   :  { %v479_v40 = vpop.eup %478 }
 0x13d   :  { %v296_v41 = vmul.f32 %v479_v40, %v416_v39 }
 0x13e   :  { %v481_v42 = vpop.eup %480 }
 0x13f   :  { %v298_v43 = vsel %vm82_vm1, %v296_v41, 0.0  ;;  %v297_v44 = vmul.f32 %v481_v42, %v416_v39 }
 0x140   :  { %299 = vadd.xlane.f32.xlu0 %v298_v43 }
 0x141   :  { %v301_v45 = vsel %vm82_vm1, %v297_v44, 0.0 }
 0x144   :  { %302 = vadd.xlane.f32.xlu0 %v301_v45 }
 0x1cd   :  { %v300_v47 = vpop.xlane.xlu0 %299 }
 0x1ce   :  { %v311_v50 = vrot.slane %v300_v47, %v310_v48 }
 0x1d1   :  { %v303_v49 = vpop.xlane.xlu0 %302 }
 0x1d2   :  { %v315_v51 = vrot.slane %v303_v49, %v310_v48 }
 0x1d4   :  { %v317_v52 = vsel %vm316_vm2, %v315_v51, %v311_v50 }
 0x1d5   :  { %v320_v53 = vsel %vm319_vm3, %v317_v52, -inf }
 0x1d6   :  { %321 = vmax.xlane.f32.xlu1 %v320_v53 }
 0x263   :  { %v322_v56 = vpop.xlane.xlu1 %321 }
 0x264   :  { %v327_v57 = vrot.slane %v322_v56, %v268_v26  ;;  %v331_v58 = vrot.slane %v322_v56, %v330_v55 }
 0x266   :  { %v334_v59 = vsub.f32 %v300_v47, %v327_v57  ;;  %v335_v60 = vsub.f32 %v303_v49, %v331_v58 }
 0x268   :  { %v336_v61 = vmul.f32 1.442695, %v334_v59  ;;  %v338_v62 = vmul.f32 1.442695, %v335_v60 }
 0x26a   :  { %482 = vpow2.f32 %v336_v61 }
 0x26b   :  { %484 = vpow2.f32 %v338_v62 }
 0x274   :  { %v483_v63 = vpop.eup %482 }
 0x275   :  { %v485_v0 = vpop.eup %484  ;;  %343 = vperm.xlu1 %476, %v483_v63  }
 0x276   :  { %346 = vperm.xlu0 %477, %v485_v0  }
 0x2f4   :  { %v344_v1 = vpop.permute.xlu1 %343 }
 0x2f5   :  { %v347_v2 = vpop.permute.xlu0 %346  ;;  %v351_v3 = vrot.slane %v344_v1, %v310_v48 }
 0x2f6   :  { %v355_v4 = vrot.slane %v347_v2, %v310_v48 }
 0x2f8   :  { %v356_v5 = vsel %vm316_vm2, %v355_v4, %v351_v3 }
 0x2f9   :  { %v358_v6 = vsel %vm319_vm3, %v356_v5, 0.0 }
 0x2fa   :  { %359 = vadd.xlane.f32.xlu1 %v358_v6 }
 0x387   :  { %v360_v7 = vpop.xlane.xlu1 %359 }
 0x388   :  { %v365_v8 = vrot.slane %v360_v7, %v268_v26  ;;  %v369_v9 = vrot.slane %v360_v7, %v330_v55 }
 0x38a   :  { %486 = vrcp.f32 %v365_v8 }
 0x38b   :  { %488 = vrcp.f32 %v369_v9 }
 0x394   :  { %v487_v10 = vpop.eup %486 }
 0x395   :  { %v373_v11 = vmul.f32 %v487_v10, %v483_v63  ;;  %v489_v12 = vpop.eup %488 }
 0x396   :  { %v375_v13 = vmul.f32 %v489_v12, %v485_v0 }
 0x397   :  { %379 = vperm.xlu0 %477, %v373_v11  }
 0x39b   :  { %382 = vperm.xlu0 %477, %v375_v13  }
 0x416   :  { %v380_v14 = vpop.permute.xlu0 %379 }
 0x417   :  { %v387_v16 = vrot.slane %v380_v14, %v310_v48 }
 0x41a   :  { %v383_v15 = vpop.permute.xlu0 %382 }
 0x41b   :  { %v391_v17 = vrot.slane %v383_v15, %v310_v48 }
 0x41d   :  { %v392_v18 = vsel %vm316_vm2, %v391_v17, %v387_v16 }
 0x41e   :  { %394 = vst.msk [vmem:[#allocation10] sm:$0x3] %vm319_vm3, %v392_v18 }
 0x41f   :  { %589 = shalt.err (!%p586_p8)
}
 0x420   :  { %s590_s25 = scalar_lea.hbm %s753_s6, 32 }
 0x421   :  { %p591_p9 = scmp.ne.s32.totalorder %s753_s6, %s590_s25  ;;  %p594_p10 = scmp.lt.u32.totalorder %s590_s25, %s753_s6 }
 0x423   :  { %p596_p11 = pnand %p594_p10, %p591_p9 }
 0x425   :  { %599 = shalt.err (!%p596_p11)
}
 0x426   :  { %404 = dma.vmem_to_hbm [thread:$0]  %s402_s5, 32, %s753_s6, [#allocation4]  }
 0x427   :  { %606 = dma.done.wait [#allocation4], 32  }
 0x428   :  { %607 = vsyncadd [#allocation4], 4294967264 }
 0x429   :  { %408 = vsyncpa [#allocation3], 1 }
 0x42a   :  { %409 = vsyncpa [#allocation6], 1 }
 0x42b   :  { %410 = vsyncpa [#allocation9], 1 }
 0x42c   :  { %411 = vsyncpa [#allocation4], 1 }

// kernel: tpu_custom_call.1
= control target key start
LH: loop header
LB: loop body
LE: loop exit
PB: predicated region body
PF: predicated region fallthrough
CT: control target
= control target key end

     0   :  { %11 = vsyncpa [#allocation3], 0  ;;  %s747_s0 = inlined_call_operand.hbm [shape: f32[2,32], index: 0, kind: input, shape index: {}]   ;;  %s748_s1 = inlined_call_operand.hbm [shape: f32[2,8,32], index: 1, kind: input, shape index: {}]   ;;  %s749_s2 = inlined_call_operand.hbm [shape: f32[32,32], index: 2, kind: input, shape index: {}]   ;;  %s750_s3 = inlined_call_operand.hbm [shape: f32[32,32], index: 3, kind: input, shape index: {}]   ;;  %s751_s4 = inlined_call_operand.vmem [shape: f32[1,32], index: 4, kind: input, shape index: {}]   ;;  %s752_s5 = inlined_call_operand.vmem [shape: f32[1,32], index: 5, kind: input, shape index: {}]   ;;  %s753_s6 = inlined_call_operand.hbm [shape: f32[2,8], index: 6, kind: output, shape index: {}]  }
   0x1   :  { %12 = vsyncpa [#allocation6], 0 }
   0x2   :  { %13 = vsyncpa [#allocation9], 0 }
   0x3   :  { %14 = vsyncpa [#allocation4], 0  ;;  %s608_s21 = smov [#allocation5]   ;;  %s490_s25 = scalar_lea.hbm %s748_s1, 256 }
   0x4   :  { %s30_s22 = sshll.u32 %s608_s21, 4  ;;  %p491_p0 = scmp.ne.s32.totalorder %s748_s1, %s490_s25  ;;  %s31_s22 = int_to_ptr.vmem [resolvable:$true] %s30_s22 }
   0x5   :  { %p494_p1 = scmp.lt.u32.totalorder %s490_s25, %s748_s1 }
   0x7   :  { %p496_p2 = pnand %p494_p1, %p491_p0 }
   0x9   :  { %499 = shalt.err (!%p496_p2)
}
   0xa   :  { %s500_s30 = scalar_lea.vmem %s31_s22, 256  ;;  %p505_p4 = scmp.lt.s32.totalorder %s31_s22, %s31_s22 }
   0xb   :  { %p501_p3 = scmp.ne.s32.totalorder %s31_s22, %s500_s30  ;;  %p506_p5 = scmp.lt.s32.totalorder %s500_s30, %s500_s30 }
   0xd   :  { %p507_p6 = por %p506_p5, %p505_p4 }
   0xf   :  { %p508_p7 = pnand %p507_p6, %p501_p3 }
  0x11   :  { %511 = shalt.err (!%p508_p7)
}
  0x12   :  { %s609_s7 = smov 128   ;;  %s610_s8 = smov 8  }
  0x13   :  { %36 = dma.hbm_to_vmem [thread:$0]  %s748_s1, 256, %s31_s22, [#allocation6], %s609_s7, %s609_s7, %s610_s8  }
  0x14   :  { %s611_s11 = smov [#allocation2]   ;;  %s612_s13 = smov [#allocation7]  }
  0x15   :  { %s21_s12 = sshll.u32 %s611_s11, 4  ;;  %s42_s14 = sshll.u32 %s612_s13, 4  ;;  %s22_s12 = int_to_ptr.vmem [resolvable:$true] %s21_s12  ;;  %s43_s14 = int_to_ptr.vmem [resolvable:$true] %s42_s14 }
  0x16   :  { %s512_s17 = scalar_lea.hbm %s747_s0, 32 }
  0x17   :  { %p513_p8 = scmp.ne.s32.totalorder %s747_s0, %s512_s17  ;;  %p516_p9 = scmp.lt.u32.totalorder %s512_s17, %s747_s0 }
  0x19   :  { %p518_p10 = pnand %p516_p9, %p513_p8 }
  0x1b   :  { %521 = shalt.err (!%p518_p10)
}
  0x1c   :  { %s522_s1 = scalar_lea.vmem %s22_s12, 32  ;;  %p527_p12 = scmp.lt.s32.totalorder %s22_s12, %s22_s12 }
  0x1d   :  { %p523_p11 = scmp.ne.s32.totalorder %s22_s12, %s522_s1  ;;  %p528_p13 = scmp.lt.s32.totalorder %s522_s1, %s522_s1 }
  0x1f   :  { %p529_p0 = por %p528_p13, %p527_p12 }
  0x21   :  { %p530_p1 = pnand %p529_p0, %p523_p11 }
  0x23   :  { %533 = shalt.err (!%p530_p1)
}
  0x24   :  { %24 = dma.hbm_to_vmem [thread:$0]  %s747_s0, 32, %s22_s12, [#allocation3]  }
  0x25   :  { %s534_s26 = scalar_lea.hbm %s749_s2, 512 }
  0x26   :  { %p535_p2 = scmp.ne.s32.totalorder %s749_s2, %s534_s26  ;;  %p538_p3 = scmp.lt.u32.totalorder %s534_s26, %s749_s2 }
  0x28   :  { %p540_p4 = pnand %p538_p3, %p535_p2 }
  0x2a   :  { %543 = shalt.err (!%p540_p4)
}
  0x2b   :  { %s544_s9 = scalar_lea.vmem %s43_s14, 512  ;;  %p549_p6 = scmp.lt.s32.totalorder %s43_s14, %s43_s14 }
  0x2c   :  { %p545_p5 = scmp.ne.s32.totalorder %s43_s14, %s544_s9  ;;  %p550_p7 = scmp.lt.s32.totalorder %s544_s9, %s544_s9 }
  0x2e   :  { %p551_p8 = por %p550_p7, %p549_p6 }
  0x30   :  { %p552_p9 = pnand %p551_p8, %p545_p5 }
  0x32   :  { %555 = shalt.err (!%p552_p9)
}
  0x33   :  { %48 = dma.hbm_to_vmem [thread:$0]  %s749_s2, 512, %s43_s14, [#allocation6], %s609_s7, %s609_s7, %s610_s8  }
  0x34   :  { %s613_s11 = smov [#allocation8]   ;;  %s556_s16 = scalar_lea.hbm %s750_s3, 512 }
  0x35   :  { %s54_s12 = sshll.u32 %s613_s11, 4  ;;  %p557_p10 = scmp.ne.s32.totalorder %s750_s3, %s556_s16  ;;  %s55_s12 = int_to_ptr.vmem [resolvable:$true] %s54_s12 }
  0x36   :  { %p560_p11 = scmp.lt.u32.totalorder %s556_s16, %s750_s3 }
  0x38   :  { %p562_p12 = pnand %p560_p11, %p557_p10 }
  0x3a   :  { %565 = shalt.err (!%p562_p12)
}
  0x3b   :  { %s566_s21 = scalar_lea.vmem %s55_s12, 512  ;;  %p571_p0 = scmp.lt.s32.totalorder %s55_s12, %s55_s12 }
  0x3c   :  { %p567_p13 = scmp.ne.s32.totalorder %s55_s12, %s566_s21  ;;  %p572_p1 = scmp.lt.s32.totalorder %s566_s21, %s566_s21 }
  0x3e   :  { %p573_p2 = por %p572_p1, %p571_p0 }
  0x40   :  { %p574_p3 = pnand %p573_p2, %p567_p13 }
  0x42   :  { %577 = shalt.err (!%p574_p3)
}
  0x43   :  { %60 = dma.hbm_to_vmem [thread:$0]  %s750_s3, 512, %s55_s12, [#allocation9], %s609_s7, %s609_s7, %s610_s8  }
  0x44   :  { %600 = dma.done.wait [#allocation3], 32  }
  0x45   :  { %601 = vsyncadd [#allocation3], 4294967264 }
  0x46   :  { %602 = dma.done.wait [#allocation6], 768  }
  0x47   :  { %603 = vsyncadd [#allocation6], 4294966528 }
  0x48   :  { %604 = dma.done.wait [#allocation9], 512  }
  0x49   :  { %605 = vsyncadd [#allocation9], 4294966784  ;;  %v614_v0 = vmov 0.0|0.0   ;;  %vm615_vm0 = vmmov 0   ;;  %v616_v1 = vmov 0.0   ;;  %v78_v2 = vld [vmem:[#allocation7] sm:$0xff]  ;;  %v247_v19 = vlaneseq }
  0x4a   :  { %450 = vmatprep.subr.bf16.mxu0 %v614_v0  ;;  %436 = vmatprep.mubr.msk.f32.mxu0 %vm615_vm0, %v616_v1  ;;  %v79_v3 = vld [vmem:[#allocation7 + $0x8] sm:$0xff]  ;;  %v158_v4 = vld [vmem:[#allocation8] sm:$0xff]  ;;  %v80_v7 = vld [vmem:[#allocation7 + $0x10] sm:$0xff]  ;;  %vm82_vm1 = vcmask 261120   ;;  %v617_v17 = vmov 1966171168  }
  0x4b   :  { %v451_v5 = vpack.c.bf16 %v79_v3, %v78_v2  ;;  %v159_v6 = vld [vmem:[#allocation8 + $0x8] sm:$0xff]  ;;  %v81_v8 = vld [vmem:[#allocation7 + $0x18] sm:$0xff]  ;;  %v160_v10 = vld [vmem:[#allocation8 + $0x10] sm:$0xff]  ;;  %v245_v18 = vunpack.c.l.s4 %v617_v17  ;;  %v715_v21 = vshrl.u32 %v247_v19, 7  ;;  %v307_v46 = vand.u32 127, %v247_v19 }
  0x4c   :  { %v456_v9 = vpack.c.bf16 %v159_v6, %v158_v4  ;;  %v161_v11 = vld [vmem:[#allocation8 + $0x18] sm:$0xff]  ;;  %v454_v12 = vpack.c.bf16 %v81_v8, %v80_v7  ;;  %v156_v14 = vld [vmem:[#allocation5] sm:$0xff]  ;;  %v77_v15 = vld [vmem:[#allocation2] sm:$0x3]  ;;  %vm316_vm2 = vcmask 1041409   ;;  %vm319_vm3 = vcmask 58368  }
  0x4d   :  { %452 = vmatpush3.bf16.msra.mxu0 %v451_v5  ;;  %v460_v13 = vpack.c.bf16 %v161_v11, %v160_v10  ;;  %447 = vmatprep.mubr.msk.f32.mxu1 %vm82_vm1, %v156_v14  ;;  %v157_v16 = vld [vmem:[#allocation5 + $0x8] sm:$0xff]  ;;  %v246_v20 = vunpack.c.0.s8 %v245_v18  ;;  %v268_v26 = vsub.s32 0, %v715_v21  ;;  %v415_v33 = vld [vmem:[%s751_s4] ss:$0 sm:$0xff]  ;;  %v310_v48 = vsub.s32 %v307_v46, %v715_v21  ;;  %s619_s4 = smov [#allocation10]  }
  0x4e   :  { %453 = vmatprep.subr.bf16.mxu0 %v614_v0  ;;  %457 = vmatprep.subr.bf16.mxu1 %v456_v9  ;;  %v416_v39 = vld [vmem:[%s752_s5] ss:$0 sm:$0xff]  ;;  %v618_v54 = vmov 0   ;;  %v330_v55 = vsub.s32 1, %v715_v21  ;;  %s401_s5 = sshll.u32 %s619_s4, 4  ;;  %s402_s5 = int_to_ptr.vmem [resolvable:$true] %s401_s5 }
  0x4f   :  { %459 = vmatpush3.bf16.msra.mxu1 %v456_v9  ;;  %v249_v22 = vsub.s32 %v246_v20, %v715_v21  ;;  %477 = vset.pattern.permute.xlu0 %v618_v54  ;;  %s578_s22 = scalar_lea.vmem %s402_s5, 32  ;;  %p583_p5 = scmp.lt.s32.totalorder %s402_s5, %s402_s5 }
  0x50   :  { %461 = vmatprep.subr.bf16.mxu1 %v460_v13  ;;  %476 = vset.pattern.permute.xlu1 %v618_v54  ;;  %p579_p4 = scmp.ne.s32.totalorder %s402_s5, %s578_s22  ;;  %p584_p6 = scmp.lt.s32.totalorder %s578_s22, %s578_s22 }
  0x51   :  { %455 = vmatpush3.bf16.msra.mxu0 %v454_v12 }
  0x52   :  { %p585_p7 = por %p584_p6, %p583_p5 }
  0x53   :  { %463 = vmatpush3.bf16.msra.mxu1 %v460_v13 }
  0x54   :  { %437 = vmatmul.mubr.msk.f32.vlgmr.msra.gmra.mrb[0].mxu0 %vm82_vm1, %v77_v15  ;;  %p586_p8 = pnand %p585_p7, %p579_p4 }
  0x56   :  { %448 = vmatmul.mubr.msk.f32.vlgmr.msra.gmra.mrb[0].mxu1 %vm82_vm1, %v157_v16 }
 0x127   :  { %v152_v23 = vpop.f32.mrb[0].mxu0 }
 0x128   :  { %v250_v24 = vrot.slane %v152_v23, %v249_v22  ;;  %v438_v25 = vpop.f32.mrb[1].mxu0 }
 0x129   :  { %v449_v27 = vpop.f32.mrb[0].mxu1 }
 0x12a   :  { %v251_v28 = vcombine.high %v250_v24, %v250_v24  ;;  %v258_v29 = vrot.slane %v250_v24, %v249_v22  ;;  %v234_v30 = vpop.f32.mrb[1].mxu1 }
 0x12c   :  { %v265_v31 = vrot.slane %v251_v28, %v249_v22  ;;  %v269_v32 = vrot.slane %v258_v29, %v268_v26 }
 0x12e   :  { %v273_v34 = vrot.slane %v265_v31, %v268_v26  ;;  %v276_v35 = vadd.f32 %v269_v32, %v234_v30 }
 0x130   :  { %v277_v36 = vadd.f32 %v449_v27, %v273_v34  ;;  %v285_v37 = vadd.f32 %v415_v33, %v276_v35 }
 0x132   :  { %v286_v38 = vadd.f32 %v415_v33, %v277_v36  ;;  %478 = vtanh.f32 %v285_v37 }
 0x134   :  { %480 = vtanh.f32 %v286_v38 }
 0x13c   :  { %v479_v40 = vpop.eup %478 }
 0x13d   :  { %v296_v41 = vmul.f32 %v479_v40, %v416_v39 }
 0x13e   :  { %v481_v42 = vpop.eup %480 }
 0x13f   :  { %v298_v43 = vsel %vm82_vm1, %v296_v41, 0.0  ;;  %v297_v44 = vmul.f32 %v481_v42, %v416_v39 }
 0x140   :  { %299 = vadd.xlane.f32.xlu0 %v298_v43 }
 0x141   :  { %v301_v45 = vsel %vm82_vm1, %v297_v44, 0.0 }
 0x144   :  { %302 = vadd.xlane.f32.xlu0 %v301_v45 }
 0x1cd   :  { %v300_v47 = vpop.xlane.xlu0 %299 }
 0x1ce   :  { %v311_v50 = vrot.slane %v300_v47, %v310_v48 }
 0x1d1   :  { %v303_v49 = vpop.xlane.xlu0 %302 }
 0x1d2   :  { %v315_v51 = vrot.slane %v303_v49, %v310_v48 }
 0x1d4   :  { %v317_v52 = vsel %vm316_vm2, %v315_v51, %v311_v50 }
 0x1d5   :  { %v320_v53 = vsel %vm319_vm3, %v317_v52, -inf }
 0x1d6   :  { %321 = vmax.xlane.f32.xlu1 %v320_v53 }
 0x263   :  { %v322_v56 = vpop.xlane.xlu1 %321 }
 0x264   :  { %v327_v57 = vrot.slane %v322_v56, %v268_v26  ;;  %v331_v58 = vrot.slane %v322_v56, %v330_v55 }
 0x266   :  { %v334_v59 = vsub.f32 %v300_v47, %v327_v57  ;;  %v335_v60 = vsub.f32 %v303_v49, %v331_v58 }
 0x268   :  { %v336_v61 = vmul.f32 1.442695, %v334_v59  ;;  %v338_v62 = vmul.f32 1.442695, %v335_v60 }
 0x26a   :  { %482 = vpow2.f32 %v336_v61 }
 0x26b   :  { %484 = vpow2.f32 %v338_v62 }
 0x274   :  { %v483_v63 = vpop.eup %482 }
 0x275   :  { %v485_v0 = vpop.eup %484  ;;  %343 = vperm.xlu1 %476, %v483_v63  }
 0x276   :  { %346 = vperm.xlu0 %477, %v485_v0  }
 0x2f4   :  { %v344_v1 = vpop.permute.xlu1 %343 }
 0x2f5   :  { %v347_v2 = vpop.permute.xlu0 %346  ;;  %v351_v3 = vrot.slane %v344_v1, %v310_v48 }
 0x2f6   :  { %v355_v4 = vrot.slane %v347_v2, %v310_v48 }
 0x2f8   :  { %v356_v5 = vsel %vm316_vm2, %v355_v4, %v351_v3 }
 0x2f9   :  { %v358_v6 = vsel %vm319_vm3, %v356_v5, 0.0 }
 0x2fa   :  { %359 = vadd.xlane.f32.xlu1 %v358_v6 }
 0x387   :  { %v360_v7 = vpop.xlane.xlu1 %359 }
 0x388   :  { %v365_v8 = vrot.slane %v360_v7, %v268_v26  ;;  %v369_v9 = vrot.slane %v360_v7, %v330_v55 }
 0x38a   :  { %486 = vrcp.f32 %v365_v8 }
 0x38b   :  { %488 = vrcp.f32 %v369_v9 }
 0x394   :  { %v487_v10 = vpop.eup %486 }
 0x395   :  { %v373_v11 = vmul.f32 %v487_v10, %v483_v63  ;;  %v489_v12 = vpop.eup %488 }
 0x396   :  { %v375_v13 = vmul.f32 %v489_v12, %v485_v0 }
 0x397   :  { %379 = vperm.xlu0 %477, %v373_v11  }
 0x39b   :  { %382 = vperm.xlu0 %477, %v375_v13  }
 0x416   :  { %v380_v14 = vpop.permute.xlu0 %379 }
 0x417   :  { %v387_v16 = vrot.slane %v380_v14, %v310_v48 }
 0x41a   :  { %v383_v15 = vpop.permute.xlu0 %382 }
 0x41b   :  { %v391_v17 = vrot.slane %v383_v15, %v310_v48 }
 0x41d   :  { %v392_v18 = vsel %vm316_vm2, %v391_v17, %v387_v16 }
 0x41e   :  { %394 = vst.msk [vmem:[#allocation10] sm:$0x3] %vm319_vm3, %v392_v18 }
 0x41f   :  { %589 = shalt.err (!%p586_p8)
}
 0x420   :  { %s590_s25 = scalar_lea.hbm %s753_s6, 32 }
 0x421   :  { %p591_p9 = scmp.ne.s32.totalorder %s753_s6, %s590_s25  ;;  %p594_p10 = scmp.lt.u32.totalorder %s590_s25, %s753_s6 }
 0x423   :  { %p596_p11 = pnand %p594_p10, %p591_p9 }
 0x425   :  { %599 = shalt.err (!%p596_p11)
}
 0x426   :  { %404 = dma.vmem_to_hbm [thread:$0]  %s402_s5, 32, %s753_s6, [#allocation4]  }
 0x427   :  { %606 = dma.done.wait [#allocation4], 32  }
 0x428   :  { %607 = vsyncadd [#allocation4], 4294967264 }
 0x429   :  { %408 = vsyncpa [#allocation3], 1 }
 0x42a   :  { %409 = vsyncpa [#allocation6], 1 }
 0x42b   :  { %410 = vsyncpa [#allocation9], 1 }
 0x42c   :  { %411 = vsyncpa [#allocation4], 1 }

</bundles_post_ra>
